<compile_context>
chip_gen: v7x
topology: tpu7x:2x2x1
jax: 0.10.0
libtpu: 0.0.40
codegen_flags: <defaults>
</compile_context>

<pallas_src>
import jax
import jax.numpy as jnp
from jax.experimental import pallas as pl
from jax.experimental.pallas import tpu as pltpu

IN_FEATURES = 768
NUM_CLASSES = 3
N_PAD = 128          # lane-dense padded class dimension
NEG_FILL = -1e30     # padded bias lanes -> exp(padded - max) == 0 in softmax


def _round_up(n, m):
    return ((n + m - 1) // m) * m


def _linear_softmax_kernel(x_ref, w_ref, b_ref, o_ref):
    # x_ref: (TB, 768) bf16/f32; w_ref: (768, 128) same dtype; b_ref: (1, 128) f32
    # o_ref: (TB, 128) f32 -- lanes 3..127 are exactly 0 because bias = NEG_FILL.
    logits = jnp.dot(x_ref[...], w_ref[...],
                     preferred_element_type=jnp.float32) + b_ref[...]
    m = jnp.max(logits, axis=-1, keepdims=True)
    e = jnp.exp(logits - m)
    denom = jnp.sum(e, axis=-1, keepdims=True)
    o_ref[...] = (e * pl.reciprocal(denom, approx=False)).astype(o_ref.dtype)


def linear_classifier_head(x, w, b, *, max_tile=512):
    """x: (B, 768) pooled BERT output (f32 or bf16); w: (3, 768); b: (3,).
    Returns softmax(x @ w.T + b), shape (B, 3), float32."""
    B = x.shape[0]
    dtype = x.dtype

    # Batch tile: largest tile <= max_tile rows, multiple of 8 sublanes.
    TB = min(max_tile, _round_up(B, 8))
    B_pad = _round_up(B, TB)
    if B_pad != B:
        x = jnp.pad(x, ((0, B_pad - B), (0, 0)))

    # Lane-dense padded weight (768, 128) and bias (1, 128).
    w_p = jnp.zeros((IN_FEATURES, N_PAD), dtype=dtype).at[:, :NUM_CLASSES].set(
        w.T.astype(dtype))
    b_p = jnp.full((1, N_PAD), NEG_FILL, dtype=jnp.float32).at[:, :NUM_CLASSES].set(
        b.astype(jnp.float32))

    cost = pl.CostEstimate(
        flops=2 * B_pad * IN_FEATURES * N_PAD,
        transcendentals=B_pad * N_PAD,
        bytes_accessed=(B_pad * IN_FEATURES * x.dtype.itemsize
                        + IN_FEATURES * N_PAD * w_p.dtype.itemsize
                        + N_PAD * 4
                        + B_pad * N_PAD * 4),
    )

    out = pl.pallas_call(
        _linear_softmax_kernel,
        out_shape=jax.ShapeDtypeStruct((B_pad, N_PAD), jnp.float32),
        grid=(B_pad // TB,),
        in_specs=[
            pl.BlockSpec((TB, IN_FEATURES), lambda i: (i, 0)),     # x tile per step
            pl.BlockSpec((IN_FEATURES, N_PAD), lambda i: (0, 0)),  # weights resident
            pl.BlockSpec((1, N_PAD), lambda i: (0, 0)),            # bias resident
        ],
        out_specs=pl.BlockSpec((TB, N_PAD), lambda i: (i, 0)),
        compiler_params=pltpu.CompilerParams(
            dimension_semantics=("parallel",),
        ),
        cost_estimate=cost,
    )(x, w_p, b_p)

    return out[:B, :NUM_CLASSES]


if __name__ == "__main__":
    key = jax.random.PRNGKey(0)
    k_x, k_w, k_b = jax.random.split(key, 3)

    B = 8  # small demo batch

    # Synthetic "BERT pooled output" activation, shape (B, 768).
    x = jax.random.normal(k_x, (B, IN_FEATURES), dtype=jnp.float32)

    # fc1 params, PyTorch-default-style uniform(-1/sqrt(in), 1/sqrt(in)).
    bound = 1.0 / (IN_FEATURES ** 0.5)
    w = jax.random.uniform(k_w, (NUM_CLASSES, IN_FEATURES),
                           minval=-bound, maxval=bound, dtype=jnp.float32)
    b = jax.random.uniform(k_b, (NUM_CLASSES,),
                           minval=-bound, maxval=bound, dtype=jnp.float32)

    ref = jax.nn.softmax(x @ w.T + b, axis=1)

    # f32 activation path (tight tolerance).
    out_f32 = jax.block_until_ready(linear_classifier_head(x, w, b))
    assert out_f32.shape == (B, NUM_CLASSES)
    assert jnp.allclose(out_f32, ref, atol=1e-5, rtol=1e-5)
    assert jnp.allclose(jnp.sum(out_f32, axis=1), 1.0, atol=1e-5)

    # bf16 activation path (halves HBM traffic; MXU accumulates in f32).
    out_bf16 = jax.block_until_ready(
        linear_classifier_head(x.astype(jnp.bfloat16), w, b))
    assert out_bf16.shape == (B, NUM_CLASSES)
    assert jnp.allclose(out_bf16, ref, atol=2e-2)
    assert jnp.allclose(jnp.sum(out_bf16, axis=1), 1.0, atol=1e-3)

    print("KERNEL_OK")
</pallas_src>

<mosaic_0001>
module attributes {stable_mosaic.version = 11 : i64} {
  func.func @_linear_softmax_kernel(%arg0: i32, %arg1: memref<8x768xf32, #tpu.memory_space<vmem>>, %arg2: memref<768x128xf32, #tpu.memory_space<vmem>>, %arg3: memref<1x128xf32, #tpu.memory_space<vmem>>, %arg4: memref<8x128xf32, #tpu.memory_space<vmem>>) attributes {dimension_semantics = [#tpu.dimension_semantics<parallel>], iteration_bounds = array<i64: 1>, scalar_prefetch = 0 : i64, scratch_operands = 0 : i64, tpu.core_type = #tpu.core_type<tc>, window_params = [{transform_indices = @transform_0, window_bounds = array<i64: 8, 768>}, {pipeline_mode = #tpu.pipeline_mode<synchronous>, transform_indices = @transform_1, window_bounds = array<i64: 768, 128>}, {pipeline_mode = #tpu.pipeline_mode<synchronous>, transform_indices = @transform_2, window_bounds = array<i64: 1, 128>}, {transform_indices = @transform_3, window_bounds = array<i64: 8, 128>}]} {
    %c0 = arith.constant 0 : index
    %c0_0 = arith.constant 0 : index
    %0 = vector.load %arg1[%c0, %c0_0] : memref<8x768xf32, #tpu.memory_space<vmem>>, vector<8x768xf32>
    %c0_1 = arith.constant 0 : index
    %c0_2 = arith.constant 0 : index
    %1 = vector.load %arg2[%c0_1, %c0_2] : memref<768x128xf32, #tpu.memory_space<vmem>>, vector<768x128xf32>
    %cst = arith.constant dense<0.000000e+00> : vector<8x128xf32>
    %2 = tpu.matmul %0, %1, %cst {dimension_numbers = #tpu.dot_dimension_numbers<[1], [0], [0], [1], [0, 0, 1, 1], [], []>} : vector<8x768xf32>, vector<768x128xf32>, vector<8x128xf32> -> vector<8x128xf32>
    %c0_3 = arith.constant 0 : index
    %c0_4 = arith.constant 0 : index
    %3 = vector.load %arg3[%c0_3, %c0_4] : memref<1x128xf32, #tpu.memory_space<vmem>>, vector<1x128xf32>
    %4 = vector.broadcast %3 : vector<1x128xf32> to vector<8x128xf32>
    %5 = arith.addf %2, %4 : vector<8x128xf32>
    %cst_5 = arith.constant dense<0xFF800000> : vector<8xf32>
    %6 = vector.multi_reduction <maximumf>, %5, %cst_5 [1] : vector<8x128xf32> to vector<8xf32>
    %7 = vector.shape_cast %6 : vector<8xf32> to vector<8x1xf32>
    %8 = vector.broadcast %7 : vector<8x1xf32> to vector<8x128xf32>
    %9 = arith.subf %5, %8 : vector<8x128xf32>
    %10 = math.exp %9 : vector<8x128xf32>
    %cst_6 = arith.constant dense<0.000000e+00> : vector<8xf32>
    %11 = vector.multi_reduction <add>, %10, %cst_6 [1] : vector<8x128xf32> to vector<8xf32>
    %12 = vector.shape_cast %11 : vector<8xf32> to vector<8x1xf32>
    %13 = tpu.reciprocal %12 : vector<8x1xf32> -> vector<8x1xf32>
    %14 = vector.broadcast %13 : vector<8x1xf32> to vector<8x128xf32>
    %15 = arith.mulf %10, %14 : vector<8x128xf32>
    %c0_7 = arith.constant 0 : index
    %c0_8 = arith.constant 0 : index
    %16 = vector.load %arg4[%c0_7, %c0_8] : memref<8x128xf32, #tpu.memory_space<vmem>>, vector<8x128xf32>
    tpu.vector_store %arg4[%c0_7, %c0_8], %15 {strides = array<i32>} : memref<8x128xf32, #tpu.memory_space<vmem>>, vector<8x128xf32>,
    return
  }
  func.func @transform_0(%arg0: i32) -> (i32, i32) {
    %c0_i32 = arith.constant 0 : i32
    %c0_i32_0 = arith.constant 0 : i32
    return %arg0, %c0_i32 : i32, i32
  }
  func.func @transform_1(%arg0: i32) -> (i32, i32) {
    %c0_i32 = arith.constant 0 : i32
    %c0_i32_0 = arith.constant 0 : i32
    %c0_i32_1 = arith.constant 0 : i32
    return %c0_i32, %c0_i32_0 : i32, i32
  }
  func.func @transform_2(%arg0: i32) -> (i32, i32) {
    %c0_i32 = arith.constant 0 : i32
    %c0_i32_0 = arith.constant 0 : i32
    %c0_i32_1 = arith.constant 0 : i32
    return %c0_i32, %c0_i32_0 : i32, i32
  }
  func.func @transform_3(%arg0: i32) -> (i32, i32) {
    %c0_i32 = arith.constant 0 : i32
    %c0_i32_0 = arith.constant 0 : i32
    return %arg0, %c0_i32 : i32, i32
  }
}

</mosaic_0001>

<bundles_post_ra>
// kernel: tpu_custom_call.1
= control target key start
LH: loop header
LB: loop body
LE: loop exit
PB: predicated region body
PF: predicated region fallthrough
CT: control target
= control target key end

     0   :  { %8 = vsyncpa [#allocation3], 0  ;;  %s740_s0 = inlined_call_operand.hbm [shape: f32[8,768], index: 0, kind: input, shape index: {}]   ;;  %s741_s1 = inlined_call_operand.hbm [shape: f32[768,128], index: 1, kind: input, shape index: {}]   ;;  %s742_s2 = inlined_call_operand.vmem [shape: f32[1,128], index: 2, kind: input, shape index: {}]   ;;  %s743_s3 = inlined_call_operand.hbm [shape: f32[8,128], index: 3, kind: output, shape index: {}]  }
   0x1   :  { %9 = vsyncpa [#allocation6], 0 }
   0x2   :  { %10 = vsyncpa [#allocation4], 0  ;;  %s669_s12 = smov [#allocation2]   ;;  %s670_s14 = smov [#allocation5]  }
   0x3   :  { %s17_s13 = sshll.u32 %s669_s12, 4  ;;  %s26_s15 = sshll.u32 %s670_s14, 4  ;;  %s18_s13 = int_to_ptr.vmem [resolvable:$true] %s17_s13  ;;  %s694_s15 = int_to_ptr.vmem [resolvable:$true] %s26_s15 }
   0x4   :  { %s597_s18 = scalar_lea.hbm %s740_s0, 768 }
   0x5   :  { %p598_p0 = scmp.ne.s32.totalorder %s740_s0, %s597_s18  ;;  %p601_p1 = scmp.lt.u32.totalorder %s597_s18, %s740_s0 }
   0x7   :  { %p603_p2 = pnand %p601_p1, %p598_p0 }
   0x9   :  { %606 = shalt.err (!%p603_p2)
}
   0xa   :  { %s607_s23 = scalar_lea.vmem %s18_s13, 768  ;;  %p612_p4 = scmp.lt.s32.totalorder %s18_s13, %s18_s13 }
   0xb   :  { %p608_p3 = scmp.ne.s32.totalorder %s18_s13, %s607_s23  ;;  %p613_p5 = scmp.lt.s32.totalorder %s607_s23, %s607_s23 }
   0xd   :  { %p614_p6 = por %p613_p5, %p612_p4 }
   0xf   :  { %p615_p7 = pnand %p614_p6, %p608_p3 }
  0x11   :  { %618 = shalt.err (!%p615_p7)
}
  0x12   :  { %20 = dma.hbm_to_vmem [thread:$0]  %s740_s0, 768, %s18_s13, [#allocation3]  }
  0x13   :  { %s619_s28 = scalar_lea.hbm %s741_s1, 12288 }
  0x14   :  { %p620_p8 = scmp.ne.s32.totalorder %s741_s1, %s619_s28  ;;  %p623_p9 = scmp.lt.u32.totalorder %s619_s28, %s741_s1 }
  0x16   :  { %p625_p10 = pnand %p623_p9, %p620_p8 }
  0x18   :  { %628 = shalt.err (!%p625_p10)
}
  0x19   :  { %s629_s6 = scalar_lea.vmem %s694_s15, 12288  ;;  %p634_p12 = scmp.lt.s32.totalorder %s694_s15, %s694_s15 }
  0x1a   :  { %p630_p11 = scmp.ne.s32.totalorder %s694_s15, %s629_s6  ;;  %p635_p13 = scmp.lt.s32.totalorder %s629_s6, %s629_s6 }
  0x1c   :  { %p636_p0 = por %p635_p13, %p634_p12 }
  0x1e   :  { %p637_p1 = pnand %p636_p0, %p630_p11 }
  0x20   :  { %640 = shalt.err (!%p637_p1)
}
  0x21   :  { %s671_s0 = smov 128   ;;  %s672_s7 = smov 8  }
  0x22   :  { %32 = dma.hbm_to_vmem [thread:$0]  %s741_s1, 12288, %s694_s15, [#allocation6], %s671_s0, %s671_s0, %s672_s7  }
  0x23   :  { %663 = dma.done.wait [#allocation3], 768  }
  0x24   :  { %664 = vsyncadd [#allocation3], 4294966528 }
  0x25   :  { %665 = dma.done.wait [#allocation6], 12288  }
  0x26   :  { %666 = vsyncadd [#allocation6], 4294955008  ;;  %v63_v0 = vld [vmem:[#allocation5 + $0x80] sm:$0xff]  ;;  %v64_v1 = vld [vmem:[#allocation5 + $0x88] sm:$0xff] }
  0x27   :  { %v47_v2 = vld [vmem:[#allocation5] sm:$0xff]  ;;  %v492_v3 = vpack.c.bf16 %v64_v1, %v63_v0  ;;  %v48_v4 = vld [vmem:[#allocation5 + $0x8] sm:$0xff]  ;;  %v65_v11 = vld [vmem:[#allocation5 + $0x90] sm:$0xff] }
  0x28   :  { %v95_v5 = vld [vmem:[#allocation5 + $0x180] sm:$0xff]  ;;  %v96_v6 = vld [vmem:[#allocation5 + $0x188] sm:$0xff]  ;;  %v494_v7 = vpack.c.bf16 %v48_v4, %v47_v2  ;;  %v66_v13 = vld [vmem:[#allocation5 + $0x98] sm:$0xff] }
  0x29   :  { %v524_v8 = vpack.c.bf16 %v96_v6, %v95_v5  ;;  %v79_v9 = vld [vmem:[#allocation5 + $0x100] sm:$0xff]  ;;  %v80_v10 = vld [vmem:[#allocation5 + $0x108] sm:$0xff]  ;;  %493 = vmatprep.subr.bf16.mxu0 %v492_v3  ;;  %v49_v14 = vld [vmem:[#allocation5 + $0x10] sm:$0xff]  ;;  %v496_v16 = vpack.c.bf16 %v66_v13, %v65_v11 }
  0x2a   :  { %v526_v12 = vpack.c.bf16 %v80_v10, %v79_v9  ;;  %v50_v15 = vld [vmem:[#allocation5 + $0x18] sm:$0xff]  ;;  %495 = vmatpush3.bf16.msra.mxu0 %v494_v7  ;;  %v97_v18 = vld [vmem:[#allocation5 + $0x190] sm:$0xff]  ;;  %v67_v23 = vld [vmem:[#allocation5 + $0xa0] sm:$0xff] }
  0x2b   :  { %525 = vmatprep.subr.bf16.mxu1 %v524_v8  ;;  %v498_v17 = vpack.c.bf16 %v50_v15, %v49_v14  ;;  %v98_v19 = vld [vmem:[#allocation5 + $0x198] sm:$0xff]  ;;  %v81_v20 = vld [vmem:[#allocation5 + $0x110] sm:$0xff]  ;;  %v68_v24 = vld [vmem:[#allocation5 + $0xa8] sm:$0xff]  ;;  %497 = vmatprep.subr.bf16.mxu0 %v496_v16 }
  0x2c   :  { %527 = vmatpush3.bf16.msra.mxu1 %v526_v12  ;;  %v528_v21 = vpack.c.bf16 %v98_v19, %v97_v18  ;;  %v82_v22 = vld [vmem:[#allocation5 + $0x118] sm:$0xff]  ;;  %v500_v26 = vpack.c.bf16 %v68_v24, %v67_v23  ;;  %v51_v27 = vld [vmem:[#allocation5 + $0x20] sm:$0xff]  ;;  %v52_v28 = vld [vmem:[#allocation5 + $0x28] sm:$0xff] }
  0x2d   :  { %v530_v25 = vpack.c.bf16 %v82_v22, %v81_v20  ;;  %v99_v29 = vld [vmem:[#allocation5 + $0x1a0] sm:$0xff]  ;;  %v100_v30 = vld [vmem:[#allocation5 + $0x1a8] sm:$0xff]  ;;  %v502_v33 = vpack.c.bf16 %v52_v28, %v51_v27  ;;  %v69_v35 = vld [vmem:[#allocation5 + $0xb0] sm:$0xff] }
  0x2e   :  { %529 = vmatprep.subr.bf16.mxu1 %v528_v21  ;;  %v83_v31 = vld [vmem:[#allocation5 + $0x120] sm:$0xff]  ;;  %v84_v32 = vld [vmem:[#allocation5 + $0x128] sm:$0xff]  ;;  %499 = vmatpush3.bf16.msra.mxu0 %v498_v17  ;;  %v532_v34 = vpack.c.bf16 %v100_v30, %v99_v29  ;;  %v70_v36 = vld [vmem:[#allocation5 + $0xb8] sm:$0xff] }
  0x2f   :  { %v53_v37 = vld [vmem:[#allocation5 + $0x30] sm:$0xff]  ;;  %501 = vmatprep.subr.bf16.mxu0 %v500_v26  ;;  %v534_v38 = vpack.c.bf16 %v84_v32, %v83_v31  ;;  %v504_v39 = vpack.c.bf16 %v70_v36, %v69_v35  ;;  %v54_v40 = vld [vmem:[#allocation5 + $0x38] sm:$0xff]  ;;  %v71_v46 = vld [vmem:[#allocation5 + $0xc0] sm:$0xff] }
  0x30   :  { %531 = vmatpush3.bf16.msra.mxu1 %v530_v25  ;;  %v101_v41 = vld [vmem:[#allocation5 + $0x1b0] sm:$0xff]  ;;  %v102_v42 = vld [vmem:[#allocation5 + $0x1b8] sm:$0xff]  ;;  %v72_v47 = vld [vmem:[#allocation5 + $0xc8] sm:$0xff]  ;;  %v506_v48 = vpack.c.bf16 %v54_v40, %v53_v37 }
  0x31   :  { %533 = vmatprep.subr.bf16.mxu1 %v532_v34  ;;  %v536_v43 = vpack.c.bf16 %v102_v42, %v101_v41  ;;  %v85_v44 = vld [vmem:[#allocation5 + $0x130] sm:$0xff]  ;;  %v86_v45 = vld [vmem:[#allocation5 + $0x138] sm:$0xff]  ;;  %v103_v49 = vld [vmem:[#allocation5 + $0x1c0] sm:$0xff]  ;;  %v508_v52 = vpack.c.bf16 %v72_v47, %v71_v46 }
  0x32   :  { %503 = vmatpush3.bf16.msra.mxu0 %v502_v33  ;;  %v104_v50 = vld [vmem:[#allocation5 + $0x1c8] sm:$0xff]  ;;  %v538_v51 = vpack.c.bf16 %v86_v45, %v85_v44  ;;  %v55_v53 = vld [vmem:[#allocation5 + $0x40] sm:$0xff]  ;;  %v73_v58 = vld [vmem:[#allocation5 + $0xd0] sm:$0xff] }
  0x33   :  { %505 = vmatprep.subr.bf16.mxu0 %v504_v39  ;;  %v56_v54 = vld [vmem:[#allocation5 + $0x48] sm:$0xff]  ;;  %v87_v55 = vld [vmem:[#allocation5 + $0x140] sm:$0xff]  ;;  %v540_v56 = vpack.c.bf16 %v104_v50, %v103_v49  ;;  %v74_v59 = vld [vmem:[#allocation5 + $0xd8] sm:$0xff] }
  0x34   :  { %535 = vmatpush3.bf16.msra.mxu1 %v534_v38  ;;  %v88_v57 = vld [vmem:[#allocation5 + $0x148] sm:$0xff]  ;;  %v105_v60 = vld [vmem:[#allocation5 + $0x1d0] sm:$0xff]  ;;  %v106_v61 = vld [vmem:[#allocation5 + $0x1d8] sm:$0xff]  ;;  %v510_v62 = vpack.c.bf16 %v56_v54, %v55_v53  ;;  %v512_v0 = vpack.c.bf16 %v74_v59, %v73_v58 }
  0x35   :  { %537 = vmatprep.subr.bf16.mxu1 %v536_v43  ;;  %v542_v63 = vpack.c.bf16 %v88_v57, %v87_v55  ;;  %v57_v1 = vld [vmem:[#allocation5 + $0x50] sm:$0xff]  ;;  %v58_v2 = vld [vmem:[#allocation5 + $0x58] sm:$0xff]  ;;  %v544_v4 = vpack.c.bf16 %v106_v61, %v105_v60  ;;  %v75_v6 = vld [vmem:[#allocation5 + $0xe0] sm:$0xff] }
  0x36   :  { %507 = vmatpush3.bf16.msra.mxu0 %v506_v48  ;;  %v89_v3 = vld [vmem:[#allocation5 + $0x150] sm:$0xff]  ;;  %v90_v5 = vld [vmem:[#allocation5 + $0x158] sm:$0xff]  ;;  %v76_v7 = vld [vmem:[#allocation5 + $0xe8] sm:$0xff]  ;;  %v514_v10 = vpack.c.bf16 %v58_v2, %v57_v1 }
  0x37   :  { %509 = vmatprep.subr.bf16.mxu0 %v508_v52  ;;  %v107_v8 = vld [vmem:[#allocation5 + $0x1e0] sm:$0xff]  ;;  %v108_v9 = vld [vmem:[#allocation5 + $0x1e8] sm:$0xff]  ;;  %v42_v12 = vld [vmem:[#allocation2 + $0x8] sm:$0xff]  ;;  %v546_v13 = vpack.c.bf16 %v90_v5, %v89_v3  ;;  %v516_v14 = vpack.c.bf16 %v76_v7, %v75_v6 }
  0x38   :  { %539 = vmatpush3.bf16.msra.mxu1 %v538_v51  ;;  %v59_v11 = vld [vmem:[#allocation5 + $0x60] sm:$0xff]  ;;  %v60_v15 = vld [vmem:[#allocation5 + $0x68] sm:$0xff]  ;;  %v548_v18 = vpack.c.bf16 %v108_v9, %v107_v8  ;;  %v77_v19 = vld [vmem:[#allocation5 + $0xf0] sm:$0xff]  ;;  %214 = vmatprep.mubr.f32.mxu0 %v42_v12 }
  0x39   :  { %541 = vmatprep.subr.bf16.mxu1 %v540_v56  ;;  %v91_v16 = vld [vmem:[#allocation5 + $0x160] sm:$0xff]  ;;  %v92_v17 = vld [vmem:[#allocation5 + $0x168] sm:$0xff]  ;;  %v78_v20 = vld [vmem:[#allocation5 + $0xf8] sm:$0xff]  ;;  %v518_v24 = vpack.c.bf16 %v60_v15, %v59_v11 }
  0x3a   :  { %511 = vmatpush3.bf16.msra.mxu0 %v510_v62  ;;  %v44_v21 = vld [vmem:[#allocation2 + $0x18] sm:$0xff]  ;;  %v109_v22 = vld [vmem:[#allocation5 + $0x1f0] sm:$0xff]  ;;  %v110_v23 = vld [vmem:[#allocation5 + $0x1f8] sm:$0xff]  ;;  %v550_v25 = vpack.c.bf16 %v92_v17, %v91_v16  ;;  %v520_v26 = vpack.c.bf16 %v78_v20, %v77_v19 }
  0x3b   :  { %513 = vmatprep.subr.bf16.mxu0 %v512_v0  ;;  %284 = vmatprep.mubr.f32.mxu1 %v44_v21  ;;  %v61_v27 = vld [vmem:[#allocation5 + $0x70] sm:$0xff]  ;;  %v62_v28 = vld [vmem:[#allocation5 + $0x78] sm:$0xff]  ;;  %v552_v30 = vpack.c.bf16 %v110_v23, %v109_v22  ;;  %v127_v32 = vld [vmem:[#allocation5 + $0x280] sm:$0xff] }
  0x3c   :  { %543 = vmatpush3.bf16.msra.mxu1 %v542_v63  ;;  %v93_v29 = vld [vmem:[#allocation5 + $0x170] sm:$0xff]  ;;  %v94_v31 = vld [vmem:[#allocation5 + $0x178] sm:$0xff]  ;;  %v128_v33 = vld [vmem:[#allocation5 + $0x288] sm:$0xff]  ;;  %v522_v34 = vpack.c.bf16 %v62_v28, %v61_v27 }
  0x3d   :  { %545 = vmatprep.subr.bf16.mxu1 %v544_v4  ;;  %v554_v35 = vpack.c.bf16 %v94_v31, %v93_v29  ;;  %v556_v36 = vpack.c.bf16 %v128_v33, %v127_v32  ;;  %v111_v37 = vld [vmem:[#allocation5 + $0x200] sm:$0xff]  ;;  %v112_v38 = vld [vmem:[#allocation5 + $0x208] sm:$0xff]  ;;  %v129_v39 = vld [vmem:[#allocation5 + $0x290] sm:$0xff] }
  0x3e   :  { %515 = vmatpush3.bf16.msra.mxu0 %v514_v10  ;;  %v130_v40 = vld [vmem:[#allocation5 + $0x298] sm:$0xff]  ;;  %v41_v41 = vld [vmem:[#allocation2] sm:$0xff]  ;;  %v558_v42 = vpack.c.bf16 %v112_v38, %v111_v37  ;;  %v43_v43 = vld [vmem:[#allocation2 + $0x10] sm:$0xff] }
  0x3f   :  { %517 = vmatprep.subr.bf16.mxu0 %v516_v14  ;;  %v560_v44 = vpack.c.bf16 %v130_v40, %v129_v39  ;;  %v113_v45 = vld [vmem:[#allocation5 + $0x210] sm:$0xff]  ;;  %v114_v46 = vld [vmem:[#allocation5 + $0x218] sm:$0xff]  ;;  %v131_v47 = vld [vmem:[#allocation5 + $0x2a0] sm:$0xff] }
  0x40   :  { %547 = vmatpush3.bf16.msra.mxu1 %v546_v13  ;;  %v132_v48 = vld [vmem:[#allocation5 + $0x2a8] sm:$0xff]  ;;  %v46_v49 = vld [vmem:[#allocation2 + $0x28] sm:$0xff]  ;;  %v562_v50 = vpack.c.bf16 %v114_v46, %v113_v45  ;;  %v115_v52 = vld [vmem:[#allocation5 + $0x220] sm:$0xff] }
  0x41   :  { %549 = vmatprep.subr.bf16.mxu1 %v548_v18  ;;  %v564_v51 = vpack.c.bf16 %v132_v48, %v131_v47  ;;  %v116_v53 = vld [vmem:[#allocation5 + $0x228] sm:$0xff]  ;;  %v133_v54 = vld [vmem:[#allocation5 + $0x2b0] sm:$0xff]  ;;  %v134_v55 = vld [vmem:[#allocation5 + $0x2b8] sm:$0xff] }
  0x42   :  { %519 = vmatpush3.bf16.msra.mxu0 %v518_v24  ;;  %v566_v56 = vpack.c.bf16 %v116_v53, %v115_v52  ;;  %v568_v57 = vpack.c.bf16 %v134_v55, %v133_v54  ;;  %v117_v58 = vld [vmem:[#allocation5 + $0x230] sm:$0xff]  ;;  %v118_v59 = vld [vmem:[#allocation5 + $0x238] sm:$0xff]  ;;  %v135_v60 = vld [vmem:[#allocation5 + $0x2c0] sm:$0xff] }
  0x43   :  { %521 = vmatprep.subr.bf16.mxu0 %v520_v26  ;;  %v136_v61 = vld [vmem:[#allocation5 + $0x2c8] sm:$0xff]  ;;  %v570_v62 = vpack.c.bf16 %v118_v59, %v117_v58  ;;  %v119_v0 = vld [vmem:[#allocation5 + $0x240] sm:$0xff]  ;;  %v137_v2 = vld [vmem:[#allocation5 + $0x2d0] sm:$0xff] }
  0x44   :  { %551 = vmatpush3.bf16.msra.mxu1 %v550_v25  ;;  %v572_v63 = vpack.c.bf16 %v136_v61, %v135_v60  ;;  %v120_v1 = vld [vmem:[#allocation5 + $0x248] sm:$0xff]  ;;  %v138_v3 = vld [vmem:[#allocation5 + $0x2d8] sm:$0xff]  ;;  %v121_v6 = vld [vmem:[#allocation5 + $0x250] sm:$0xff] }
  0x45   :  { %553 = vmatprep.subr.bf16.mxu1 %v552_v30  ;;  %v574_v4 = vpack.c.bf16 %v120_v1, %v119_v0  ;;  %v576_v5 = vpack.c.bf16 %v138_v3, %v137_v2  ;;  %v122_v7 = vld [vmem:[#allocation5 + $0x258] sm:$0xff]  ;;  %v139_v8 = vld [vmem:[#allocation5 + $0x2e0] sm:$0xff]  ;;  %v140_v9 = vld [vmem:[#allocation5 + $0x2e8] sm:$0xff] }
  0x46   :  { %523 = vmatpush3.bf16.msra.mxu0 %v522_v34  ;;  %v578_v10 = vpack.c.bf16 %v122_v7, %v121_v6  ;;  %v580_v11 = vpack.c.bf16 %v140_v9, %v139_v8  ;;  %v123_v12 = vld [vmem:[#allocation5 + $0x260] sm:$0xff]  ;;  %v124_v13 = vld [vmem:[#allocation5 + $0x268] sm:$0xff]  ;;  %v141_v14 = vld [vmem:[#allocation5 + $0x2f0] sm:$0xff] }
  0x47   :  { %557 = vmatprep.subr.bf16.mxu0 %v556_v36  ;;  %v142_v15 = vld [vmem:[#allocation5 + $0x2f8] sm:$0xff]  ;;  %v582_v16 = vpack.c.bf16 %v124_v13, %v123_v12  ;;  %v125_v18 = vld [vmem:[#allocation5 + $0x270] sm:$0xff] }
  0x48   :  { %555 = vmatpush3.bf16.msra.mxu1 %v554_v35  ;;  %v584_v17 = vpack.c.bf16 %v142_v15, %v141_v14  ;;  %v126_v19 = vld [vmem:[#allocation5 + $0x278] sm:$0xff]  ;;  %v45_v21 = vld [vmem:[#allocation2 + $0x20] sm:$0xff] }
  0x49   :  { %215 = vmatmul.mubr.f32.vlgmr.msra.gmra.mrb[0].mxu0 %v41_v41  ;;  %v586_v20 = vpack.c.bf16 %v126_v19, %v125_v18  ;;  %v386_v23 = vld [vmem:[%s742_s2] ss:$0 sm:$0xff]  ;;  %s673_s2 = smov [#allocation7]  }
  0x4a   :  { %559 = vmatpush3.bf16.msra.mxu0 %v558_v42  ;;  %354 = vmatprep.mubr.f32.mxu0 %v46_v49  ;;  %s376_s11 = sshll.u32 %s673_s2, 4  ;;  %s377_s11 = int_to_ptr.vmem [resolvable:$true] %s376_s11 }
  0x4b   :  { %285 = vmatmul.mubr.f32.vlgmr.msra.gmra.mrb[0].mxu1 %v43_v43  ;;  %561 = vmatprep.subr.bf16.mxu0 %v560_v44  ;;  %s641_s12 = scalar_lea.vmem %s377_s11, 128  ;;  %p646_p3 = scmp.lt.s32.totalorder %s377_s11, %s377_s11 }
  0x4c   :  { %p642_p2 = scmp.ne.s32.totalorder %s377_s11, %s641_s12  ;;  %p647_p4 = scmp.lt.s32.totalorder %s641_s12, %s641_s12 }
  0x4e   :  { %563 = vmatpush3.bf16.msra.mxu0 %v562_v50  ;;  %p648_p5 = por %p647_p4, %p646_p3 }
  0x4f   :  { %565 = vmatprep.subr.bf16.mxu0 %v564_v51 }
  0x50   :  { %p649_p6 = pnand %p648_p5, %p642_p2 }
  0x52   :  { %567 = vmatpush3.bf16.msra.mxu0 %v566_v56 }
  0x53   :  { %569 = vmatprep.subr.bf16.mxu0 %v568_v57 }
  0x56   :  { %571 = vmatpush3.bf16.msra.mxu0 %v570_v62 }
  0x57   :  { %573 = vmatprep.subr.bf16.mxu0 %v572_v63 }
  0x5a   :  { %575 = vmatpush3.bf16.msra.mxu0 %v574_v4 }
  0x5b   :  { %577 = vmatprep.subr.bf16.mxu0 %v576_v5 }
  0x5e   :  { %579 = vmatpush3.bf16.msra.mxu0 %v578_v10 }
  0x5f   :  { %581 = vmatprep.subr.bf16.mxu0 %v580_v11 }
  0x62   :  { %583 = vmatpush3.bf16.msra.mxu0 %v582_v16 }
  0x63   :  { %585 = vmatprep.subr.bf16.mxu0 %v584_v17 }
  0x66   :  { %587 = vmatpush3.bf16.msra.mxu0 %v586_v20 }
  0x69   :  { %355 = vmatmul.mubr.f32.vlgmr.msra.gmra.mrb[2].mxu0 %v45_v21 }
 0x11c   :  { %v419_v22 = vpop.f32.mrb[0].mxu0 }
 0x11d   :  { %v420_v24 = vpop.f32.mrb[1].mxu0 }
 0x11e   :  { %v454_v25 = vpop.f32.mrb[0].mxu1  ;;  %v421_v26 = vadd.f32 %v420_v24, %v419_v22 }
 0x11f   :  { %v455_v27 = vpop.f32.mrb[1].mxu1 }
 0x120   :  { %v456_v28 = vadd.f32 %v455_v27, %v454_v25  ;;  %v217_v29 = vadd.f32 %v421_v26, %v386_v23 }
 0x122   :  { %v287_v30 = vadd.f32 %v456_v28, %v217_v29 }
 0x13c   :  { %v489_v31 = vpop.f32.mrb[2].mxu0 }
 0x13d   :  { %v490_v32 = vpop.f32.mrb[3].mxu0 }
 0x13e   :  { %v491_v33 = vadd.f32 %v490_v32, %v489_v31 }
 0x140   :  { %v357_v34 = vadd.f32 %v491_v33, %v287_v30 }
 0x142   :  { %360 = vmax.xlane.f32.xlu0 %v357_v34 }
 0x1cf   :  { %v361_v35 = vpop.xlane.xlu0 %360 }
 0x1d0   :  { %v362_v36 = vsub.f32 %v357_v34, %v361_v35 }
 0x1d2   :  { %v363_v37 = vmul.f32 1.442695, %v362_v36 }
 0x1d4   :  { %593 = vpow2.f32 %v363_v37 }
 0x1de   :  { %v594_v38 = vpop.eup %593 }
 0x1df   :  { %365 = vadd.xlane.f32.xlu0 %v594_v38 }
 0x26c   :  { %v366_v39 = vpop.xlane.xlu0 %365 }
 0x26d   :  { %595 = vrcp.f32 %v366_v39 }
 0x277   :  { %v596_v40 = vpop.eup %595 }
 0x278   :  { %v368_v41 = vmul.f32 %v596_v40, %v594_v38 }
 0x27a   :  { %369 = vst [vmem:[#allocation7] sm:$0xff] %v368_v41 }
 0x27b   :  { %652 = shalt.err (!%p649_p6)
}
 0x27c   :  { %s653_s15 = scalar_lea.hbm %s743_s3, 128 }
 0x27d   :  { %p654_p7 = scmp.ne.s32.totalorder %s743_s3, %s653_s15  ;;  %p657_p8 = scmp.lt.u32.totalorder %s653_s15, %s743_s3 }
 0x27f   :  { %p659_p9 = pnand %p657_p8, %p654_p7 }
 0x281   :  { %662 = shalt.err (!%p659_p9)
}
 0x282   :  { %379 = dma.vmem_to_hbm [thread:$0]  %s377_s11, 128, %s743_s3, [#allocation4]  }
 0x283   :  { %667 = dma.done.wait [#allocation4], 128  }
 0x284   :  { %668 = vsyncadd [#allocation4], 4294967168 }
 0x285   :  { %383 = vsyncpa [#allocation3], 1 }
 0x286   :  { %384 = vsyncpa [#allocation6], 1 }
 0x287   :  { %385 = vsyncpa [#allocation4], 1 }

</bundles_post_ra>
